<compile_context>
chip_gen: v7x
topology: tpu7x:2x2x1
jax: 0.10.0
libtpu: 0.0.40
codegen_flags: <defaults>
</compile_context>

<pallas_src>
import numpy as np

import jax
import jax.numpy as jnp
from jax import lax
from jax.experimental import pallas as pl
from jax.experimental.pallas import tpu as pltpu


_INV_SQRT2 = float(1.0 / np.sqrt(2.0))


def _make_kernel(c_in: int, c_out: int, t: int, k: int, b_blk: int,
                 compute_dtype):
    """Per-grid-step kernel. Refs:
       x_ref  : (b_blk, C_in, T + 2*pad) f32  edge-padded input
       w1_ref : (C_out, K*C_in)  compute_dtype  im2col-packed conv1 weight
       g1,b1  : (C_out, 1) f32   InstanceNorm1 affine
       w2_ref : (C_out, K*C_out) compute_dtype  im2col-packed conv2 weight
       g2,b2  : (C_out, 1) f32   InstanceNorm2 affine
       o_ref  : (b_blk, C_out, T) f32
    """
    pad = (k - 1) // 2

    def gelu(v):  # exact erf GELU, matches torch.nn.GELU()
        return 0.5 * v * (1.0 + lax.erf(v * _INV_SQRT2))

    def instance_norm(y, g, b):
        mean = jnp.mean(y, axis=1, keepdims=True)
        cen = y - mean
        var = jnp.mean(cen * cen, axis=1, keepdims=True)   # biased, like PyTorch
        return cen * lax.rsqrt(var + 1e-5) * g + b

    def im2col(xpad):
        # xpad: (C, T + 2*pad) -> (K*C, T); row (kk*C + i) = xpad[i, kk:kk+T]
        return jnp.concatenate([xpad[:, kk:kk + t] for kk in range(k)], axis=0)

    def kernel(x_ref, w1_ref, g1_ref, b1_ref, w2_ref, g2_ref, b2_ref, o_ref):
        w1 = w1_ref[...]
        w2 = w2_ref[...]
        g1 = g1_ref[...]
        b1 = b1_ref[...]
        g2 = g2_ref[...]
        b2 = b2_ref[...]

        for bb in range(b_blk):               # static fold of samples per step
            xp = x_ref[bb]                                     # (C_in, T+2p) f32

            # ---- conv1 (single MXU matmul over K*C_in) -> IN1 -> GELU ----
            cols1 = im2col(xp.astype(compute_dtype))           # (K*C_in, T)
            h = jnp.dot(w1, cols1, preferred_element_type=jnp.float32)
            h = gelu(instance_norm(h, g1, b1))                 # (C_out, T) f32

            # ---- replicate-pad h in time, conv2, IN2 ----
            if pad > 0:
                hl = jnp.broadcast_to(h[:, :1], (c_out, pad))
                hr = jnp.broadcast_to(h[:, t - 1:], (c_out, pad))
                hpad = jnp.concatenate([hl, h, hr], axis=1)    # (C_out, T+2p)
            else:
                hpad = h
            cols2 = im2col(hpad.astype(compute_dtype))         # (K*C_out, T)
            h2 = jnp.dot(w2, cols2, preferred_element_type=jnp.float32)
            h2 = instance_norm(h2, g2, b2)                     # (C_out, T) f32

            # ---- residual (channel zero-pad of the original f32 x) + GELU ----
            x_c = xp[:, pad:pad + t]                           # (C_in, T) f32
            if c_in < c_out:
                res = jnp.concatenate(
                    [x_c, jnp.zeros((c_out - c_in, t), jnp.float32)], axis=0)
            else:
                res = x_c
            o_ref[bb] = gelu(res + h2).astype(o_ref.dtype)

    return kernel


def _pick_batch_block(n: int, c_out: int, t: int) -> int:
    # Fold samples per grid step only when the per-sample slab is tiny, while
    # keeping >= 2 grid steps so both v7x TensorCores stay busy.
    for cand in (8, 4, 2, 1):
        if n % cand == 0 and n // cand >= 2 and cand * c_out * t * 4 <= (1 << 20):
            return cand
    return 1


def res_conv1d_block(x, w1, g1, b1, w2, g2, b2, downsampling_method: int = 0,
                     compute_dtype=jnp.bfloat16, batch_block=None):
    """x: (N, C_in, T) f32.  w1: (C_out, C_in, K), w2: (C_out, C_out, K).
    downsampling_method accepted for API parity; unused (downsample=False)."""
    del downsampling_method
    n, c_in, t = x.shape
    c_out, c_in_w, k = w1.shape
    assert c_in_w == c_in and c_in <= c_out and k % 2 == 1
    assert w2.shape == (c_out, c_out, k)
    pad = (k - 1) // 2

    if batch_block is None:
        batch_block = _pick_batch_block(n, c_out, t)
    assert n % batch_block == 0
    grid = (n // batch_block,)

    # ---- wrapper glue: edge time-padding (kept f32 so the residual is exact),
    #      im2col weight packing Wp[o, kk*C + i] = w[o, i, kk] ----
    x_pad = jnp.pad(x.astype(jnp.float32), ((0, 0), (0, 0), (pad, pad)),
                    mode="edge")
    w1p = jnp.transpose(w1, (0, 2, 1)).reshape(c_out, k * c_in).astype(compute_dtype)
    w2p = jnp.transpose(w2, (0, 2, 1)).reshape(c_out, k * c_out).astype(compute_dtype)
    g1c = g1.reshape(c_out, 1).astype(jnp.float32)
    b1c = b1.reshape(c_out, 1).astype(jnp.float32)
    g2c = g2.reshape(c_out, 1).astype(jnp.float32)
    b2c = b2.reshape(c_out, 1).astype(jnp.float32)

    kernel = _make_kernel(c_in, c_out, t, k, batch_block, compute_dtype)

    def const_spec(shape):
        nd = len(shape)
        return pl.BlockSpec(shape, lambda i, _nd=nd: (0,) * _nd)

    # Rough per-step working set (double-buffered I/O, weights, im2col temps).
    est = (2 * batch_block * (c_in * (t + 2 * pad) + c_out * t) * 4
           + 2 * (int(w1p.size) + int(w2p.size)) * 2
           + 8 * c_out * 4
           + 4 * k * c_out * t * 2
           + 8 * c_out * t * 4)
    vmem_limit = int(min(max(4 * est, 32 * 2 ** 20), 64 * 2 ** 20))

    return pl.pallas_call(
        kernel,
        out_shape=jax.ShapeDtypeStruct((n, c_out, t), jnp.float32),
        grid=grid,
        in_specs=[
            pl.BlockSpec((batch_block, c_in, t + 2 * pad), lambda i: (i, 0, 0)),
            const_spec((c_out, k * c_in)),                      # w1 packed
            const_spec((c_out, 1)), const_spec((c_out, 1)),     # gamma1, beta1
            const_spec((c_out, k * c_out)),                     # w2 packed
            const_spec((c_out, 1)), const_spec((c_out, 1)),     # gamma2, beta2
        ],
        out_specs=pl.BlockSpec((batch_block, c_out, t), lambda i: (i, 0, 0)),
        compiler_params=pltpu.CompilerParams(
            dimension_semantics=("parallel",),
            vmem_limit_bytes=vmem_limit),
    )(x_pad, w1p, g1c, b1c, w2p, g2c, b2c)


# ------------------------- pure-JAX reference ------------------------------
# Matches the kernel's matmul precision (bf16 operands, f32 accumulation); all
# norm / GELU / residual math is f32, like the kernel.
def _reference(x, w1, g1, b1, w2, g2, b2, compute_dtype=jnp.bfloat16):
    n, c_in, t = x.shape
    c_out, _, k = w1.shape
    pad = (k - 1) // 2

    def conv_rep(inp, w):
        xp = jnp.pad(inp, ((0, 0), (0, 0), (pad, pad)), mode="edge")
        return lax.conv_general_dilated(
            xp.astype(compute_dtype), w.astype(compute_dtype),
            window_strides=(1,), padding="VALID",
            dimension_numbers=("NCH", "OIH", "NCH"),
            preferred_element_type=jnp.float32)

    def inorm(y, g, b):
        m = y.mean(axis=2, keepdims=True)
        c = y - m
        v = (c * c).mean(axis=2, keepdims=True)
        return c * lax.rsqrt(v + 1e-5) * g[None, :, None] + b[None, :, None]

    def gelu(v):
        return 0.5 * v * (1.0 + lax.erf(v * _INV_SQRT2))

    x_init = jnp.pad(x, ((0, 0), (0, c_out - c_in), (0, 0)))
    h = gelu(inorm(conv_rep(x, w1), g1, b1))
    h = inorm(conv_rep(h, w2), g2, b2)
    return gelu(x_init + h)


if __name__ == "__main__":
    N, C_IN, C_OUT, T, K = 2, 4, 8, 16, 11

    key = jax.random.PRNGKey(0)
    kx, k1, k2, kg1, kb1, kg2, kb2 = jax.random.split(key, 7)

    x = jax.random.normal(kx, (N, C_IN, T), jnp.float32)
    w1 = jax.random.normal(k1, (C_OUT, C_IN, K), jnp.float32) * 0.2
    w2 = jax.random.normal(k2, (C_OUT, C_OUT, K), jnp.float32) * 0.2
    g1 = 1.0 + 0.1 * jax.random.normal(kg1, (C_OUT,), jnp.float32)
    b1 = 0.1 * jax.random.normal(kb1, (C_OUT,), jnp.float32)
    g2 = 1.0 + 0.1 * jax.random.normal(kg2, (C_OUT,), jnp.float32)
    b2 = 0.1 * jax.random.normal(kb2, (C_OUT,), jnp.float32)

    out = res_conv1d_block(x, w1, g1, b1, w2, g2, b2, downsampling_method=0)
    out = jax.block_until_ready(out)

    ref = jax.block_until_ready(_reference(x, w1, g1, b1, w2, g2, b2))
    np.testing.assert_allclose(np.asarray(out), np.asarray(ref),
                               rtol=1e-2, atol=1e-2)
    assert out.shape == (N, C_OUT, T)
    print("KERNEL_OK")
</pallas_src>

<mosaic_0001>
module attributes {stable_mosaic.version = 11 : i64} {
  func.func @kernel(%arg0: i32, %arg1: memref<1x4x26xf32, #tpu.memory_space<vmem>>, %arg2: memref<8x44xbf16, #tpu.memory_space<vmem>>, %arg3: memref<8x1xf32, #tpu.memory_space<vmem>>, %arg4: memref<8x1xf32, #tpu.memory_space<vmem>>, %arg5: memref<8x88xbf16, #tpu.memory_space<vmem>>, %arg6: memref<8x1xf32, #tpu.memory_space<vmem>>, %arg7: memref<8x1xf32, #tpu.memory_space<vmem>>, %arg8: memref<1x8x16xf32, #tpu.memory_space<vmem>>) attributes {dimension_semantics = [#tpu.dimension_semantics<parallel>], iteration_bounds = array<i64: 2>, scalar_prefetch = 0 : i64, scratch_operands = 0 : i64, tpu.core_type = #tpu.core_type<tc>, window_params = [{transform_indices = @transform_0, window_bounds = array<i64: 1, 4, 26>}, {pipeline_mode = #tpu.pipeline_mode<synchronous>, transform_indices = @transform_1, window_bounds = array<i64: 8, 44>}, {pipeline_mode = #tpu.pipeline_mode<synchronous>, transform_indices = @transform_2, window_bounds = array<i64: 8, 1>}, {pipeline_mode = #tpu.pipeline_mode<synchronous>, transform_indices = @transform_3, window_bounds = array<i64: 8, 1>}, {pipeline_mode = #tpu.pipeline_mode<synchronous>, transform_indices = @transform_4, window_bounds = array<i64: 8, 88>}, {pipeline_mode = #tpu.pipeline_mode<synchronous>, transform_indices = @transform_5, window_bounds = array<i64: 8, 1>}, {pipeline_mode = #tpu.pipeline_mode<synchronous>, transform_indices = @transform_6, window_bounds = array<i64: 8, 1>}, {transform_indices = @transform_7, window_bounds = array<i64: 1, 8, 16>}]} {
    %c0 = arith.constant 0 : index
    %c0_0 = arith.constant 0 : index
    %0 = vector.load %arg2[%c0, %c0_0] : memref<8x44xbf16, #tpu.memory_space<vmem>>, vector<8x44xbf16>
    %c0_1 = arith.constant 0 : index
    %c0_2 = arith.constant 0 : index
    %1 = vector.load %arg5[%c0_1, %c0_2] : memref<8x88xbf16, #tpu.memory_space<vmem>>, vector<8x88xbf16>
    %c0_3 = arith.constant 0 : index
    %c0_4 = arith.constant 0 : index
    %2 = vector.load %arg3[%c0_3, %c0_4] : memref<8x1xf32, #tpu.memory_space<vmem>>, vector<8x1xf32>
    %c0_5 = arith.constant 0 : index
    %c0_6 = arith.constant 0 : index
    %3 = vector.load %arg4[%c0_5, %c0_6] : memref<8x1xf32, #tpu.memory_space<vmem>>, vector<8x1xf32>
    %c0_7 = arith.constant 0 : index
    %c0_8 = arith.constant 0 : index
    %4 = vector.load %arg6[%c0_7, %c0_8] : memref<8x1xf32, #tpu.memory_space<vmem>>, vector<8x1xf32>
    %c0_9 = arith.constant 0 : index
    %c0_10 = arith.constant 0 : index
    %5 = vector.load %arg7[%c0_9, %c0_10] : memref<8x1xf32, #tpu.memory_space<vmem>>, vector<8x1xf32>
    %c0_11 = arith.constant 0 : index
    %c0_12 = arith.constant 0 : index
    %c0_13 = arith.constant 0 : index
    %6 = vector.load %arg1[%c0_11, %c0_12, %c0_13] : memref<1x4x26xf32, #tpu.memory_space<vmem>>, vector<1x4x26xf32>
    %7 = vector.shape_cast %6 : vector<1x4x26xf32> to vector<4x26xf32>
    %8 = arith.truncf %7 : vector<4x26xf32> to vector<4x26xbf16>
    %9 = vector.extract_strided_slice %8 {offsets = [0, 0], sizes = [4, 16], strides = [1, 1]} : vector<4x26xbf16> to vector<4x16xbf16>
    %10 = vector.extract_strided_slice %8 {offsets = [0, 1], sizes = [4, 16], strides = [1, 1]} : vector<4x26xbf16> to vector<4x16xbf16>
    %11 = vector.extract_strided_slice %8 {offsets = [0, 2], sizes = [4, 16], strides = [1, 1]} : vector<4x26xbf16> to vector<4x16xbf16>
    %12 = vector.extract_strided_slice %8 {offsets = [0, 3], sizes = [4, 16], strides = [1, 1]} : vector<4x26xbf16> to vector<4x16xbf16>
    %13 = vector.extract_strided_slice %8 {offsets = [0, 4], sizes = [4, 16], strides = [1, 1]} : vector<4x26xbf16> to vector<4x16xbf16>
    %14 = vector.extract_strided_slice %8 {offsets = [0, 5], sizes = [4, 16], strides = [1, 1]} : vector<4x26xbf16> to vector<4x16xbf16>
    %15 = vector.extract_strided_slice %8 {offsets = [0, 6], sizes = [4, 16], strides = [1, 1]} : vector<4x26xbf16> to vector<4x16xbf16>
    %16 = vector.extract_strided_slice %8 {offsets = [0, 7], sizes = [4, 16], strides = [1, 1]} : vector<4x26xbf16> to vector<4x16xbf16>
    %17 = vector.extract_strided_slice %8 {offsets = [0, 8], sizes = [4, 16], strides = [1, 1]} : vector<4x26xbf16> to vector<4x16xbf16>
    %18 = vector.extract_strided_slice %8 {offsets = [0, 9], sizes = [4, 16], strides = [1, 1]} : vector<4x26xbf16> to vector<4x16xbf16>
    %19 = vector.extract_strided_slice %8 {offsets = [0, 10], sizes = [4, 16], strides = [1, 1]} : vector<4x26xbf16> to vector<4x16xbf16>
    %20 = tpu.concatenate %9, %10, %11, %12, %13, %14, %15, %16, %17, %18, %19 in 0 : vector<4x16xbf16>, vector<4x16xbf16>, vector<4x16xbf16>, vector<4x16xbf16>, vector<4x16xbf16>, vector<4x16xbf16>, vector<4x16xbf16>, vector<4x16xbf16>, vector<4x16xbf16>, vector<4x16xbf16>, vector<4x16xbf16> -> vector<44x16xbf16>
    %cst = arith.constant dense<0.000000e+00> : vector<8x16xf32>
    %21 = tpu.matmul %0, %20, %cst {dimension_numbers = #tpu.dot_dimension_numbers<[1], [0], [0], [1], [0, 0, 1, 1], [], []>} : vector<8x44xbf16>, vector<44x16xbf16>, vector<8x16xf32> -> vector<8x16xf32>
    %cst_14 = arith.constant dense<0.000000e+00> : vector<8xf32>
    %22 = vector.multi_reduction <add>, %21, %cst_14 [1] : vector<8x16xf32> to vector<8xf32>
    %23 = vector.shape_cast %22 : vector<8xf32> to vector<8x1xf32>
    %cst_15 = arith.constant 1.600000e+01 : f32
    %24 = vector.broadcast %cst_15 : f32 to vector<8x1xf32>
    %25 = arith.divf %23, %24 : vector<8x1xf32>
    %26 = vector.broadcast %25 : vector<8x1xf32> to vector<8x16xf32>
    %27 = arith.subf %21, %26 : vector<8x16xf32>
    %28 = arith.mulf %27, %27 : vector<8x16xf32>
    %cst_16 = arith.constant dense<0.000000e+00> : vector<8xf32>
    %29 = vector.multi_reduction <add>, %28, %cst_16 [1] : vector<8x16xf32> to vector<8xf32>
    %30 = vector.shape_cast %29 : vector<8xf32> to vector<8x1xf32>
    %cst_17 = arith.constant 1.600000e+01 : f32
    %31 = vector.broadcast %cst_17 : f32 to vector<8x1xf32>
    %32 = arith.divf %30, %31 : vector<8x1xf32>
    %cst_18 = arith.constant 9.99999974E-6 : f32
    %33 = vector.broadcast %cst_18 : f32 to vector<8x1xf32>
    %34 = arith.addf %32, %33 : vector<8x1xf32>
    %35 = math.rsqrt %34 : vector<8x1xf32>
    %36 = vector.broadcast %35 : vector<8x1xf32> to vector<8x16xf32>
    %37 = arith.mulf %27, %36 : vector<8x16xf32>
    %38 = vector.broadcast %2 : vector<8x1xf32> to vector<8x16xf32>
    %39 = arith.mulf %37, %38 : vector<8x16xf32>
    %40 = vector.broadcast %3 : vector<8x1xf32> to vector<8x16xf32>
    %41 = arith.addf %39, %40 : vector<8x16xf32>
    %cst_19 = arith.constant 5.000000e-01 : f32
    %42 = vector.broadcast %cst_19 : f32 to vector<8x16xf32>
    %43 = arith.mulf %42, %41 : vector<8x16xf32>
    %cst_20 = arith.constant 0.707106769 : f32
    %44 = vector.broadcast %cst_20 : f32 to vector<8x16xf32>
    %45 = arith.mulf %41, %44 : vector<8x16xf32>
    %46 = math.erf %45 : vector<8x16xf32>
    %cst_21 = arith.constant 1.000000e+00 : f32
    %47 = vector.broadcast %cst_21 : f32 to vector<8x16xf32>
    %48 = arith.addf %47, %46 : vector<8x16xf32>
    %49 = arith.mulf %43, %48 : vector<8x16xf32>
    %50 = vector.extract_strided_slice %49 {offsets = [0, 0], sizes = [8, 1], strides = [1, 1]} : vector<8x16xf32> to vector<8x1xf32>
    %51 = vector.shape_cast %50 : vector<8x1xf32> to vector<8x1xf32>
    %52 = vector.broadcast %51 : vector<8x1xf32> to vector<8x5xf32>
    %53 = vector.extract_strided_slice %49 {offsets = [0, 15], sizes = [8, 1], strides = [1, 1]} : vector<8x16xf32> to vector<8x1xf32>
    %54 = vector.shape_cast %53 : vector<8x1xf32> to vector<8x1xf32>
    %55 = vector.broadcast %54 : vector<8x1xf32> to vector<8x5xf32>
    %56 = tpu.concatenate %52, %49, %55 in 1 : vector<8x5xf32>, vector<8x16xf32>, vector<8x5xf32> -> vector<8x26xf32>
    %57 = arith.truncf %56 : vector<8x26xf32> to vector<8x26xbf16>
    %58 = vector.extract_strided_slice %57 {offsets = [0, 0], sizes = [8, 16], strides = [1, 1]} : vector<8x26xbf16> to vector<8x16xbf16>
    %59 = vector.extract_strided_slice %57 {offsets = [0, 1], sizes = [8, 16], strides = [1, 1]} : vector<8x26xbf16> to vector<8x16xbf16>
    %60 = vector.extract_strided_slice %57 {offsets = [0, 2], sizes = [8, 16], strides = [1, 1]} : vector<8x26xbf16> to vector<8x16xbf16>
    %61 = vector.extract_strided_slice %57 {offsets = [0, 3], sizes = [8, 16], strides = [1, 1]} : vector<8x26xbf16> to vector<8x16xbf16>
    %62 = vector.extract_strided_slice %57 {offsets = [0, 4], sizes = [8, 16], strides = [1, 1]} : vector<8x26xbf16> to vector<8x16xbf16>
    %63 = vector.extract_strided_slice %57 {offsets = [0, 5], sizes = [8, 16], strides = [1, 1]} : vector<8x26xbf16> to vector<8x16xbf16>
    %64 = vector.extract_strided_slice %57 {offsets = [0, 6], sizes = [8, 16], strides = [1, 1]} : vector<8x26xbf16> to vector<8x16xbf16>
    %65 = vector.extract_strided_slice %57 {offsets = [0, 7], sizes = [8, 16], strides = [1, 1]} : vector<8x26xbf16> to vector<8x16xbf16>
    %66 = vector.extract_strided_slice %57 {offsets = [0, 8], sizes = [8, 16], strides = [1, 1]} : vector<8x26xbf16> to vector<8x16xbf16>
    %67 = vector.extract_strided_slice %57 {offsets = [0, 9], sizes = [8, 16], strides = [1, 1]} : vector<8x26xbf16> to vector<8x16xbf16>
    %68 = vector.extract_strided_slice %57 {offsets = [0, 10], sizes = [8, 16], strides = [1, 1]} : vector<8x26xbf16> to vector<8x16xbf16>
    %69 = tpu.concatenate %58, %59, %60, %61, %62, %63, %64, %65, %66, %67, %68 in 0 : vector<8x16xbf16>, vector<8x16xbf16>, vector<8x16xbf16>, vector<8x16xbf16>, vector<8x16xbf16>, vector<8x16xbf16>, vector<8x16xbf16>, vector<8x16xbf16>, vector<8x16xbf16>, vector<8x16xbf16>, vector<8x16xbf16> -> vector<88x16xbf16>
    %cst_22 = arith.constant dense<0.000000e+00> : vector<8x16xf32>
    %70 = tpu.matmul %1, %69, %cst_22 {dimension_numbers = #tpu.dot_dimension_numbers<[1], [0], [0], [1], [0, 0, 1, 1], [], []>} : vector<8x88xbf16>, vector<88x16xbf16>, vector<8x16xf32> -> vector<8x16xf32>
    %cst_23 = arith.constant dense<0.000000e+00> : vector<8xf32>
    %71 = vector.multi_reduction <add>, %70, %cst_23 [1] : vector<8x16xf32> to vector<8xf32>
    %72 = vector.shape_cast %71 : vector<8xf32> to vector<8x1xf32>
    %cst_24 = arith.constant 1.600000e+01 : f32
    %73 = vector.broadcast %cst_24 : f32 to vector<8x1xf32>
    %74 = arith.divf %72, %73 : vector<8x1xf32>
    %75 = vector.broadcast %74 : vector<8x1xf32> to vector<8x16xf32>
    %76 = arith.subf %70, %75 : vector<8x16xf32>
    %77 = arith.mulf %76, %76 : vector<8x16xf32>
    %cst_25 = arith.constant dense<0.000000e+00> : vector<8xf32>
    %78 = vector.multi_reduction <add>, %77, %cst_25 [1] : vector<8x16xf32> to vector<8xf32>
    %79 = vector.shape_cast %78 : vector<8xf32> to vector<8x1xf32>
    %cst_26 = arith.constant 1.600000e+01 : f32
    %80 = vector.broadcast %cst_26 : f32 to vector<8x1xf32>
    %81 = arith.divf %79, %80 : vector<8x1xf32>
    %cst_27 = arith.constant 9.99999974E-6 : f32
    %82 = vector.broadcast %cst_27 : f32 to vector<8x1xf32>
    %83 = arith.addf %81, %82 : vector<8x1xf32>
    %84 = math.rsqrt %83 : vector<8x1xf32>
    %85 = vector.broadcast %84 : vector<8x1xf32> to vector<8x16xf32>
    %86 = arith.mulf %76, %85 : vector<8x16xf32>
    %87 = vector.broadcast %4 : vector<8x1xf32> to vector<8x16xf32>
    %88 = arith.mulf %86, %87 : vector<8x16xf32>
    %89 = vector.broadcast %5 : vector<8x1xf32> to vector<8x16xf32>
    %90 = arith.addf %88, %89 : vector<8x16xf32>
    %91 = vector.extract_strided_slice %7 {offsets = [0, 5], sizes = [4, 16], strides = [1, 1]} : vector<4x26xf32> to vector<4x16xf32>
    %cst_28 = arith.constant 0.000000e+00 : f32
    %92 = vector.broadcast %cst_28 : f32 to vector<4x16xf32>
    %93 = tpu.concatenate %91, %92 in 0 : vector<4x16xf32>, vector<4x16xf32> -> vector<8x16xf32>
    %94 = arith.addf %93, %90 : vector<8x16xf32>
    %cst_29 = arith.constant 5.000000e-01 : f32
    %95 = vector.broadcast %cst_29 : f32 to vector<8x16xf32>
    %96 = arith.mulf %95, %94 : vector<8x16xf32>
    %cst_30 = arith.constant 0.707106769 : f32
    %97 = vector.broadcast %cst_30 : f32 to vector<8x16xf32>
    %98 = arith.mulf %94, %97 : vector<8x16xf32>
    %99 = math.erf %98 : vector<8x16xf32>
    %cst_31 = arith.constant 1.000000e+00 : f32
    %100 = vector.broadcast %cst_31 : f32 to vector<8x16xf32>
    %101 = arith.addf %100, %99 : vector<8x16xf32>
    %102 = arith.mulf %96, %101 : vector<8x16xf32>
    %c0_32 = arith.constant 0 : index
    %c0_33 = arith.constant 0 : index
    %c0_34 = arith.constant 0 : index
    %103 = vector.load %arg8[%c0_32, %c0_33, %c0_34] : memref<1x8x16xf32, #tpu.memory_space<vmem>>, vector<1x8x16xf32>
    %104 = vector.shape_cast %103 : vector<1x8x16xf32> to vector<8x16xf32>
    %105 = vector.shape_cast %102 : vector<8x16xf32> to vector<1x8x16xf32>
    tpu.vector_store %arg8[%c0_32, %c0_33, %c0_34], %105 {strides = array<i32>} : memref<1x8x16xf32, #tpu.memory_space<vmem>>, vector<1x8x16xf32>,
    return
  }
  func.func @transform_0(%arg0: i32) -> (i32, i32, i32) {
    %c0_i32 = arith.constant 0 : i32
    %c0_i32_0 = arith.constant 0 : i32
    %c0_i32_1 = arith.constant 0 : i32
    return %arg0, %c0_i32, %c0_i32_0 : i32, i32, i32
  }
  func.func @transform_1(%arg0: i32) -> (i32, i32) {
    %c0_i32 = arith.constant 0 : i32
    %c0_i32_0 = arith.constant 0 : i32
    %c0_i32_1 = arith.constant 0 : i32
    return %c0_i32, %c0_i32_0 : i32, i32
  }
  func.func @transform_2(%arg0: i32) -> (i32, i32) {
    %c0_i32 = arith.constant 0 : i32
    %c0_i32_0 = arith.constant 0 : i32
    %c0_i32_1 = arith.constant 0 : i32
    return %c0_i32, %c0_i32_0 : i32, i32
  }
  func.func @transform_3(%arg0: i32) -> (i32, i32) {
    %c0_i32 = arith.constant 0 : i32
    %c0_i32_0 = arith.constant 0 : i32
    %c0_i32_1 = arith.constant 0 : i32
    return %c0_i32, %c0_i32_0 : i32, i32
  }
  func.func @transform_4(%arg0: i32) -> (i32, i32) {
    %c0_i32 = arith.constant 0 : i32
    %c0_i32_0 = arith.constant 0 : i32
    %c0_i32_1 = arith.constant 0 : i32
    return %c0_i32, %c0_i32_0 : i32, i32
  }
  func.func @transform_5(%arg0: i32) -> (i32, i32) {
    %c0_i32 = arith.constant 0 : i32
    %c0_i32_0 = arith.constant 0 : i32
    %c0_i32_1 = arith.constant 0 : i32
    return %c0_i32, %c0_i32_0 : i32, i32
  }
  func.func @transform_6(%arg0: i32) -> (i32, i32) {
    %c0_i32 = arith.constant 0 : i32
    %c0_i32_0 = arith.constant 0 : i32
    %c0_i32_1 = arith.constant 0 : i32
    return %c0_i32, %c0_i32_0 : i32, i32
  }
  func.func @transform_7(%arg0: i32) -> (i32, i32, i32) {
    %c0_i32 = arith.constant 0 : i32
    %c0_i32_0 = arith.constant 0 : i32
    %c0_i32_1 = arith.constant 0 : i32
    return %arg0, %c0_i32, %c0_i32_0 : i32, i32, i32
  }
}

</mosaic_0001>

<bundles_post_ra>
// kernel: tpu_custom_call.1
= control target key start
LH: loop header
LB: loop body
LE: loop exit
PB: predicated region body
PF: predicated region fallthrough
CT: control target
= control target key end

     0   :  { %12 = vsyncpa [#allocation3], 0  ;;  %s1042_s0 = inlined_call_operand.vmem [shape: f32[2,4,26], index: 0, kind: input, shape index: {}]   ;;  %s1043_s1 = inlined_call_operand.vmem [shape: bf16[8,44], index: 1, kind: input, shape index: {}]   ;;  %s1044_s2 = inlined_call_operand.vmem [shape: f32[8,1], index: 2, kind: input, shape index: {}]   ;;  %s1045_s3 = inlined_call_operand.vmem [shape: f32[8,1], index: 3, kind: input, shape index: {}]   ;;  %s1046_s4 = inlined_call_operand.vmem [shape: bf16[8,88], index: 4, kind: input, shape index: {}]   ;;  %s1047_s5 = inlined_call_operand.vmem [shape: f32[8,1], index: 5, kind: input, shape index: {}]   ;;  %s1048_s6 = inlined_call_operand.vmem [shape: f32[8,1], index: 6, kind: input, shape index: {}]   ;;  %s1049_s7 = inlined_call_operand.hbm [shape: f32[2,8,16], index: 7, kind: output, shape index: {}]  }
   0x1   :  { %14 = vsyncpa [#allocation3 + $0x1], 0  ;;  %s864_s24 = smov 0   ;;  %s866_s25 = smov 0  }
   0x2   :  { %s868_s26 = smov 0   ;;  %s870_s27 = smov 0  }
   0x3 LB: > { %s885_s28 = sadd.s32 4294967295, %s806_s27   ;;  %s629_s29 = sadd.s32 4294967294, %s806_s27   ;;  %s806_s27 = sphi %s870_s27, %s1055_s27   ;;  %s802_s26 = sphi %s868_s26, %s1054_s26   ;;  %s798_s25 = sphi %s866_s25, %s1053_s25   ;;  %s794_s24 = sphi %s864_s24, %s1052_s24  }
   0x4   : > { %s889_s30 = sadd.s32 1, %s806_s27   ;;  %s179_s8 = sadd.s32 1, %s802_s26 }
   0x5   : > { %s176_s9 = ssub.s32 %s806_s27, %s889_s30  ;;  %p189_p0 = scmp.ne.s32.totalorder %s802_s26, %s798_s25 }
   0x6   : > { %p177_p1 = scmp.eq.s32.totalorder %s176_s9, 0  ;;  %p190_p2 = scmp.eq.s32.totalorder %s885_s28, 1 }
   0x7   : > { %p195_p3 = scmp.ne.s32.totalorder %s798_s25, %s794_s24  ;;  %p196_p4 = scmp.eq.s32.totalorder %s629_s29, 1 }
   0x8   : > { %s900_s10 = scalar_select %p177_p1, %s802_s26, %s179_s8  }
   0x9   : > { %p902_p5 = por %p190_p2, %p189_p0  ;;  %p906_p6 = por %p196_p4, %p195_p3 }
   0xa   : > { %p632_p7 = scmp.ge.s32.totalorder %s806_s27, 1  ;;  %p239_p8 = scmp.lt.s32.totalorder %s806_s27, 3 }
   0xc   : > { %p240_p9 = pnand %p632_p7, %p239_p8 }
   0xd   : > { %p270_p10 = scmp.lt.s32.totalorder (!%p240_p9), %s885_s28, 1  ;;  %v808_v0 = vmov (!%p240_p9), 0.0   ;;  %s809_s18 = smov (!%p240_p9), 124   ;;  %vm814_vm0 = vmmov (!%p240_p9), 0   ;;  %vm307_vm1 = vcmask (!%p240_p9), 1041408   ;;  %vm311_vm2 = vcmask (!%p240_p9), 1043456  }
   0xe   : > { %243 = sbr.rel (%p240_p9) target bundleno = 1781 (0x6f5), region = 48  ;;  %652 = vmatprep.subr.bf16.mxu0 (!%p240_p9), %v808_v0  ;;  %662 = vmatprep.subr.bf16.mxu1 (!%p240_p9), %v808_v0  ;;  %s810_s19 = smov (!%p240_p9), 127   ;;  %vm314_vm3 = vcmask (!%p240_p9), 1045504   ;;  %v275_v25 = vld [vmem:[%s1043_s1] sm:$0xf] (!%p240_p9)  ;;  %vm331_vm4 = vcmask (!%p240_p9), 359424  }
   0xf   : > { %s811_s20 = smov (!%p240_p9), 125   ;;  %s812_s21 = smov (!%p240_p9), 126   ;;  %658 = vmatprep.mubr.msk.bf16.mxu0 (!%p240_p9), %vm814_vm0, %v808_v0  ;;  %674 = vmatprep.mubr.msk.bf16.mxu1 (!%p240_p9), %vm814_vm0, %v808_v0  ;;  %vm377_vm5 = vcmask (!%p240_p9), 130048   ;;  %v277_v31 = vld [vmem:[%s1044_s2] sm:$0xff] (!%p240_p9)  ;;  %v820_v32 = vmov (!%p240_p9), 0   ;;  %v821_v53 = vmov (!%p240_p9), 15  }
  0x10   : > { %s813_s22 = smov (!%p240_p9), 122   ;;  %s815_s23 = smov (!%p240_p9), 123   ;;  %732 = vset.pattern.permute.xlu0 (!%p240_p9), %v820_v32  ;;  %733 = vset.pattern.permute.xlu1 (!%p240_p9), %v820_v32  ;;  %v278_v38 = vld [vmem:[%s1045_s3] sm:$0xff] (!%p240_p9)  ;;  %vm421_vm6 = vcmask (!%p240_p9), 39936   ;;  %vm423_vm7 = vcmask (!%p240_p9), 171008   ;;  %vm468_vm8 = vcmask (!%p240_p9), 719872  }
  0x11   : > { %s816_s29 = smov (!%p240_p9), 120   ;;  %s817_s8 = smov (!%p240_p9), 121  }
  0x12   : > { %s818_s9 = smov (!%p240_p9), 118   ;;  %s822_s16 = smov (!%p240_p9), 5  }
  0x15   : > { %s271_s13 = scalar_select %p270_p10, %s885_s28, 1 }
  0x17   : > { %s634_s14 = sshll.u32 %s271_s13, 2  ;;  %s819_s13 = smov 119  }
  0x18   : > { %s273_s17 = scalar_lea.vmem %s1042_s0, %s634_s14 }
  0x19   : > { %v919_v1 = vld [vmem:[%s273_s17] sm:$0xf] }
  0x1a   : > { %v282_v2 = vpack.c.bf16 %v919_v1, %v919_v1 }
  0x1c   : > { %v284_v3 = vrot.slane %v282_v2, 6  ;;  %293 = vrot.lane.b32.xlu1 %v282_v2, %s809_s18  ;;  %v290_v4 = vrot.slane %v282_v2, 2  ;;  %v287_v5 = vrot.slane %v282_v2, 4 }
  0x1e   : > { %285 = vrot.lane.b32.xlu0 %v284_v3, %s810_s19 }
  0x20   : > { %291 = vrot.lane.b32.xlu1 %v290_v4, %s811_s20 }
  0x22   : > { %288 = vrot.lane.b32.xlu0 %v287_v5, %s812_s21 }
  0x24   : > { %297 = vrot.lane.b32.xlu1 %v287_v5, %s813_s22 }
  0x26   : > { %295 = vrot.lane.b32.xlu0 %v284_v3, %s815_s23 }
  0x28   : > { %301 = vrot.lane.b32.xlu1 %v282_v2, %s816_s29 }
  0x2a   : > { %299 = vrot.lane.b32.xlu0 %v290_v4, %s817_s8 }
  0x2c   : > { %305 = vrot.lane.b32.xlu1 %v287_v5, %s818_s9 }
  0x2e   : > { %303 = vrot.lane.b32.xlu0 %v284_v3, %s819_s13 }
  0x8e   : > { %v294_v6 = vpop.permute.xlu1 %293 }
  0x90   : > { %v286_v7 = vpop.permute.xlu0 %285 }
  0x91   : > { %v310_v9 = vsel %vm307_vm1, %v282_v2, %v286_v7 }
  0x92   : > { %v292_v8 = vpop.permute.xlu1 %291 }
  0x94   : > { %v289_v10 = vpop.permute.xlu0 %288 }
  0x95   : > { %v313_v11 = vsel %vm311_vm2, %v310_v9, %v289_v10 }
  0x96   : > { %v316_v12 = vsel %vm314_vm3, %v313_v11, %v292_v8  ;;  %v298_v13 = vpop.permute.xlu1 %297 }
  0x97   : > { %653 = vmatpush3.bf16.msra.mxu0 %v316_v12 }
  0x98   : > { %v296_v14 = vpop.permute.xlu0 %295  ;;  %654 = vmatprep.subr.bf16.mxu0 %v808_v0 }
  0x99   : > { %v320_v15 = vsel %vm307_vm1, %v294_v6, %v296_v14 }
  0x9a   : > { %v302_v16 = vpop.permute.xlu1 %301  ;;  %v322_v17 = vsel %vm311_vm2, %v320_v15, %v298_v13  ;;  %v276_v15 = vld [vmem:[%s1046_s4] sm:$0xf] }
  0x9c   : > { %v300_v18 = vpop.permute.xlu0 %299 }
  0x9d   : > { %v324_v19 = vsel %vm314_vm3, %v322_v17, %v300_v18 }
  0x9e   : > { %655 = vmatpush3.bf16.msra.mxu0 %v324_v19  ;;  %v306_v20 = vpop.permute.xlu1 %305 }
  0x9f   : > { %656 = vmatprep.subr.bf16.mxu0 %v808_v0 }
  0xa0   : > { %v304_v21 = vpop.permute.xlu0 %303 }
  0xa1   : > { %v328_v22 = vsel %vm307_vm1, %v302_v16, %v304_v21 }
  0xa2   : > { %v330_v23 = vsel %vm311_vm2, %v328_v22, %v306_v20 }
  0xa3   : > { %v335_v24 = vsel %vm314_vm3, %v330_v23, 0 }
  0xa4   : > { %657 = vmatpush3.bf16.msra.mxu0 %v335_v24 }
  0xa7   : > { %659 = vmatmul.mubr.msk.bf16.vlgmr.msra.gmra.mrb[0].mxu0 %vm331_vm4, %v275_v25 }
 0x17a   : > { %v371_v26 = vpop.f32.mrb[0].mxu0 }
 0x17b   : > { %v660_v27 = vpop.f32.mrb[1].mxu0  ;;  %v378_v28 = vsel %vm377_vm5, %v371_v26, 0.0 }
 0x17c   : > { %379 = vadd.xlane.f32.xlu0 %v378_v28  ;;  %v374_v29 = vpop.f32.mrb[2].mxu0 }
 0x17d   : > { %v661_v30 = vpop.f32.mrb[3].mxu0 }
 0x192   : > { %394 = vperm.xlu0 %732, %v277_v31  }
 0x209   : > { %v380_v33 = vpop.xlane.xlu0 %379 }
 0x20a   : > { %v382_v34 = vmul.f32 0.0625, %v380_v33 }
 0x20c   : > { %v383_v35 = vsub.f32 %v371_v26, %v382_v34  ;;  %v279_v26 = vld [vmem:[%s1047_s5] sm:$0xff] }
 0x20e   : > { %v384_v36 = vmul.f32 %v383_v35, %v383_v35 }
 0x210   : > { %v385_v37 = vsel %vm377_vm5, %v384_v36, 0.0  ;;  %v540_v36 = vsel %vm311_vm2, %v919_v1, 0.0 }
 0x211   : > { %386 = vadd.xlane.f32.xlu1 %v385_v37  ;;  %v395_v43 = vpop.permute.xlu0 %394 }
 0x222   : > { %400 = vperm.xlu1 %733, %v278_v38  }
 0x29e   : > { %v387_v39 = vpop.xlane.xlu1 %386 }
 0x29f   : > { %v388_v40 = vmul.f32 0.0625, %v387_v39 }
 0x2a1   : > { %v389_v41 = vadd.f32 1e-05, %v388_v40 }
 0x2a2   : > { %v401_v45 = vpop.permute.xlu1 %400 }
 0x2a3   : > { %736 = vrsqrt.f32 %v389_v41 }
 0x2ad   : > { %v737_v42 = vpop.eup %736 }
 0x2ae   : > { %v391_v44 = vmul.f32 %v737_v42, %v383_v35 }
 0x2b0   : > { %v397_v46 = vmul.f32 %v395_v43, %v391_v44 }
 0x2b2   : > { %v403_v47 = vadd.f32 %v401_v45, %v397_v46 }
 0x2b4   : > { %v405_v48 = vmul.f32 0.70710677, %v403_v47  ;;  %v404_v50 = vmul.f32 0.5, %v403_v47 }
 0x2b6   : > { %738 = verf.f32 %v405_v48 }
 0x2c0   : > { %v739_v49 = vpop.eup %738 }
 0x2c1   : > { %v407_v51 = vadd.f32 1.0, %v739_v49 }
 0x2c3   : > { %v408_v52 = vmul.f32 %v407_v51, %v404_v50 }
 0x2c5   : > { %411 = vperm.xlu1 %733, %v408_v52  }
 0x2c9   : > { %734 = vset.pattern.permute.xlu1 %v821_v53 }
 0x2ca   : > { %415 = vperm.xlu1 %734, %v408_v52  }
 0x2ce   : > { %418 = vrot.lane.b32.xlu1 %v408_v52, %s822_s16 }
 0x2cf   : > { %735 = vset.pattern.permute.xlu1 %v820_v32 }
 0x344   : > { %v412_v54 = vpop.permute.xlu1 %411 }
 0x349   : > { %v416_v55 = vpop.permute.xlu1 %415 }
 0x34d   : > { %v419_v56 = vpop.permute.xlu1 %418 }
 0x34e   : > { %v422_v57 = vsel %vm421_vm6, %v412_v54, %v419_v56 }
 0x34f   : > { %v424_v58 = vsel %vm423_vm7, %v422_v57, %v416_v55 }
 0x350   : > { %v425_v59 = vpack.c.bf16 %v424_v58, %v424_v58 }
 0x352   : > { %434 = vrot.lane.b32.xlu0 %v425_v59, %s809_s18  ;;  %430 = vrot.lane.b32.xlu1 %v425_v59, %s812_s21  ;;  %v427_v60 = vrot.slane %v425_v59, 4 }
 0x356   : > { %438 = vrot.lane.b32.xlu0 %v425_v59, %s813_s22  ;;  %428 = vrot.lane.b32.xlu1 %v427_v60, %s810_s19 }
 0x35a   : > { %442 = vrot.lane.b32.xlu0 %v425_v59, %s816_s29  ;;  %432 = vrot.lane.b32.xlu1 %v427_v60, %s811_s20 }
 0x35e   : > { %446 = vrot.lane.b32.xlu0 %v425_v59, %s818_s9  ;;  %436 = vrot.lane.b32.xlu1 %v427_v60, %s815_s23 }
 0x362   : > { %440 = vrot.lane.b32.xlu1 %v427_v60, %s817_s8  ;;  %s267_s8 = sand.u32 1, %s798_s25  }
 0x363   : > { %s633_s9 = sshll.u32 %s267_s8, 3  ;;  %s557_s19 = scalar_lea.sflag [#allocation3], %s267_s8 }
 0x364   : > { %s269_s17 = scalar_lea.vmem [#allocation2], %s633_s9 }
 0x365   : > { %s570_s14 = sshll.u32 %s269_s17, 4  ;;  %s1001_s14 = int_to_ptr.vmem [resolvable:$true] %s570_s14 }
 0x366   : > { %444 = vrot.lane.b32.xlu1 %v427_v60, %s819_s13  ;;  %s638_s13 = sshll.u32 %s885_s28, 7  ;;  %s823_s28 = smov [#allocation2]  }
 0x367   : > { %s999_s18 = scalar_lea.hbm %s1049_s7, %s638_s13  ;;  %s748_s20 = sshll.u32 %s823_s28, 4  ;;  %s749_s20 = int_to_ptr.vmem [resolvable:$false] %s748_s20 }
 0x368   : > { %s750_s21 = scalar_lea.vmem %s749_s20, 256  ;;  %p751_p0 = scmp.lt.s32.totalorder %s1001_s14, %s749_s20 }
 0x3c4   : > { %v431_v61 = vpop.permute.xlu1 %430  ;;  %v435_v62 = vpop.permute.xlu0 %434 }
 0x3c8   : > { %v429_v63 = vpop.permute.xlu1 %428  ;;  %v439_v5 = vpop.permute.xlu0 %438 }
 0x3c9   : > { %v450_v2 = vsel %vm311_vm2, %v425_v59, %v429_v63 }
 0x3ca   : > { %663 = vmatpush3.bf16.msra.mxu1 %v450_v2 }
 0x3cb   : > { %664 = vmatprep.subr.bf16.mxu1 %v808_v0 }
 0x3cc   : > { %v433_v3 = vpop.permute.xlu1 %432  ;;  %v443_v8 = vpop.permute.xlu0 %442 }
 0x3cd   : > { %v454_v4 = vsel %vm311_vm2, %v431_v61, %v433_v3 }
 0x3ce   : > { %665 = vmatpush3.bf16.msra.mxu1 %v454_v4 }
 0x3cf   : > { %666 = vmatprep.subr.bf16.mxu1 %v808_v0 }
 0x3d0   : > { %v437_v6 = vpop.permute.xlu1 %436  ;;  %v447_v13 = vpop.permute.xlu0 %446 }
 0x3d1   : > { %v458_v7 = vsel %vm311_vm2, %v435_v62, %v437_v6  ;;  %v473_v14 = vsel %vm311_vm2, %v447_v13, 0 }
 0x3d2   : > { %667 = vmatpush3.bf16.msra.mxu1 %v458_v7 }
 0x3d3   : > { %668 = vmatprep.subr.bf16.mxu1 %v808_v0 }
 0x3d4   : > { %v441_v9 = vpop.permute.xlu1 %440 }
 0x3d5   : > { %v462_v10 = vsel %vm311_vm2, %v439_v5, %v441_v9 }
 0x3d6   : > { %669 = vmatpush3.bf16.msra.mxu1 %v462_v10 }
 0x3d7   : > { %670 = vmatprep.subr.bf16.mxu1 %v808_v0 }
 0x3d8   : > { %v445_v11 = vpop.permute.xlu1 %444 }
 0x3d9   : > { %v466_v12 = vsel %vm311_vm2, %v443_v8, %v445_v11 }
 0x3da   : > { %671 = vmatpush3.bf16.msra.mxu1 %v466_v12 }
 0x3db   : > { %672 = vmatprep.subr.bf16.mxu1 %v808_v0  ;;  %v280_v0 = vld [vmem:[%s1048_s6] sm:$0xff] }
 0x3de   : > { %673 = vmatpush3.bf16.msra.mxu1 %v473_v14 }
 0x3e1   : > { %675 = vmatmul.mubr.msk.bf16.vlgmr.msra.gmra.mrb[0].mxu1 %vm468_vm8, %v276_v15 }
 0x4b4   : > { %v509_v16 = vpop.f32.mrb[0].mxu1 }
 0x4b5   : > { %v676_v17 = vpop.f32.mrb[1].mxu1  ;;  %v515_v18 = vsel %vm377_vm5, %v509_v16, 0.0 }
 0x4b6   : > { %516 = vadd.xlane.f32.xlu1 %v515_v18  ;;  %v512_v19 = vpop.f32.mrb[2].mxu1 }
 0x4b7   : > { %v677_v20 = vpop.f32.mrb[3].mxu1 }
 0x4c7   : > { %536 = vperm.xlu1 %735, %v280_v0  }
 0x543   : > { %v517_v21 = vpop.xlane.xlu1 %516 }
 0x544   : > { %v518_v22 = vmul.f32 0.0625, %v517_v21 }
 0x546   : > { %v519_v23 = vsub.f32 %v509_v16, %v518_v22 }
 0x547   : > { %v537_v33 = vpop.permute.xlu1 %536 }
 0x548   : > { %v520_v24 = vmul.f32 %v519_v23, %v519_v23 }
 0x54a   : > { %v521_v25 = vsel %vm377_vm5, %v520_v24, 0.0 }
 0x54b   : > { %522 = vadd.xlane.f32.xlu0 %v521_v25 }
 0x561   : > { %530 = vperm.xlu0 %732, %v279_v26  }
 0x5d8   : > { %v523_v27 = vpop.xlane.xlu0 %522 }
 0x5d9   : > { %v524_v28 = vmul.f32 0.0625, %v523_v27 }
 0x5db   : > { %v525_v29 = vadd.f32 1e-05, %v524_v28 }
 0x5dd   : > { %740 = vrsqrt.f32 %v525_v29 }
 0x5e0   : > { %v531_v32 = vpop.permute.xlu0 %530 }
 0x5e7   : > { %v741_v30 = vpop.eup %740 }
 0x5e8   : > { %v527_v31 = vmul.f32 %v741_v30, %v519_v23 }
 0x5ea   : > { %v533_v34 = vmul.f32 %v531_v32, %v527_v31 }
 0x5ec   : > { %v539_v35 = vadd.f32 %v537_v33, %v533_v34 }
 0x5ee   : > { %542 = vrot.lane.b32.xlu1 %v539_v35, %s822_s16 }
 0x660   : > { %v543_v37 = vpop.permute.xlu1 %542 }
 0x661   : > { %v545_v38 = vadd.f32 %v543_v37, %v540_v36 }
 0x663   : > { %v547_v39 = vmul.f32 0.70710677, %v545_v38  ;;  %v546_v41 = vmul.f32 0.5, %v545_v38 }
 0x665   : > { %742 = verf.f32 %v547_v39 }
 0x66f   : > { %v743_v40 = vpop.eup %742 }
 0x670   : > { %v549_v42 = vadd.f32 1.0, %v743_v40 }
 0x672   : > { %v550_v43 = vmul.f32 %v549_v42, %v546_v41 }
 0x674   : > { %552 = vrot.lane.b32.xlu0 %v550_v43, %s815_s23  ;;  %s744_s23 = scalar_lea.vmem %s1001_s14, 128 }
 0x675   : > { %p745_p11 = scmp.ne.s32.totalorder %s1001_s14, %s744_s23  ;;  %p752_p1 = scmp.lt.s32.totalorder %s750_s21, %s744_s23 }
 0x677   : > { %p746_p12 = pnand %p745_p11, %p902_p5  ;;  %p753_p2 = por %p752_p1, %p751_p0 }
 0x679   : > { %p747_p13 = pneg %p746_p12 }
 0x67b   : > { %p754_p3 = pnand %p753_p2, %p747_p13 }
 0x6e6   : > { %v553_v1 = vpop.permute.xlu0 %552 }
 0x6e7   : > { %555 = vst.msk [vmem:[%s269_s17] sm:$0xff] %vm377_vm5, %v553_v1 }
 0x6e8   : > { %757 = shalt.err (!%p754_p3)
}
 0x6e9   : > { %s758_s22 = scalar_lea.hbm %s999_s18, 128  ;;  %s762_s9 = scalar_lea.hbm %s1049_s7, 256 }
 0x6ea   : > { %p759_p4 = scmp.ne.s32.totalorder %s999_s18, %s758_s22  ;;  %p763_p9 = scmp.lt.u32.totalorder %s999_s18, %s1049_s7 }
 0x6eb   : > { %p764_p10 = scmp.lt.u32.totalorder %s762_s9, %s758_s22  ;;  %p766_p12 = scmp.lt.u32.totalorder %s758_s22, %s999_s18 }
 0x6ec   : > { %p760_p7 = pnand %p759_p4, %p902_p5 }
 0x6ed   : > { %p765_p11 = por %p764_p10, %p763_p9 }
 0x6ee   : > { %p761_p8 = pneg %p760_p7 }
 0x6ef   : > { %p767_p13 = por %p766_p12, %p765_p11 }
 0x6f1   : > { %p768_p0 = pnand %p767_p13, %p761_p8 }
 0x6f3   : > { %771 = shalt.err (!%p768_p0)
}
 0x6f4   : > { %678 = dma.vmem_to_hbm [thread:$0]  (%p902_p5), %s1001_s14, 128, %s999_s18, %s557_s19  }
 0x6f5 PF: > { %p684_p1 = scmp.ge.s32.totalorder %s806_s27, 2  ;;  %s582_s15 = sand.u32 1, %s794_s24  }
 0x6f6   : > { %s583_s16 = scalar_lea.sflag [#allocation3], %s582_s15 }
 0x6f7   : > { %p681_p2 = pnand %p684_p1, %p906_p6 }
 0x6f9   : > { %789 = dma.done.wait (!%p681_p2), %s583_s16, 128  }
 0x6fa   : > { %791 = vsyncadd (!%p681_p2), %s583_s16, 4294967168  ;;  %p17_p3 = scmp.ge.s32.totalorder %s889_s30, 4   ;;  %s1052_s24 = smov %s798_s25 }
 0x6fb   : > { %s1053_s25 = smov %s802_s26  ;;  %s1054_s26 = smov %s900_s10 }
 0x6fc   : > { %s1055_s27 = smov %s889_s30  ;;  %19 = sbr.rel (!%p17_p3) target bundleno = 3 (0x3), region = 83 }
 0x703   :  { %588 = vsyncpa [#allocation3], 1 }
 0x704   :  { %590 = vsyncpa [#allocation3 + $0x1], 1 }

</bundles_post_ra>
